<compile_context>
chip_gen: v6e
topology: v6e:2x2x1
jax: 0.10.0
libtpu: 0.0.40
codegen_flags: <defaults>
</compile_context>

<pallas_src>
import math

import jax
import jax.numpy as jnp
from jax.experimental import pallas as pl
from jax.experimental.pallas import tpu as pltpu


def _rayleigh_kernel(scale_ref, tx_ref, e_ref, z_ref, out_ref):
    """Elementwise perfect-CSI Rayleigh channel + MRC equalization.

    E = |h|^2 ~ Exp(1);  cross = Re(n * conj(h)) = sqrt(n_var/2) * sqrt(E) * Z.
    y = tx + cross / max(E, 1e-9)   (== reference except when |h|^2 < 1e-9).
    """
    c = scale_ref[0]                                    # sqrt(n_var / 2)
    tx = tx_ref[...].astype(jnp.float32)
    e = e_ref[...]
    z = z_ref[...]
    denom = jnp.maximum(e, jnp.float32(1e-9))
    cross = (c * jnp.sqrt(e)) * z
    out_ref[...] = (tx + cross / denom).astype(out_ref.dtype)


def _choose_layout(n_total, rows_natural, cols_natural):
    """Pick a lane-dense (rows, W) slab when a pure-metadata reshape allows it."""
    for w in (1024, 512, 256, 128):
        if n_total % w == 0:
            return n_total // w, w
    return rows_natural, cols_natural


def rayleigh_channel(tx: jax.Array, n_var: float, key: jax.Array,
                     perfect_csi: bool = True,
                     max_block_rows: int = 512) -> jax.Array:
    """Pallas implementation of RayleighChannel.forward (perfect_csi=True path)."""
    # TODO(synk): perfect_csi=False path (returns the un-equalized complex rx) is not wired.
    assert perfect_csi, "only the perfect_csi=True path is wired through the kernel"

    B, S, D = tx.shape
    N = B * S * D
    n_var = max(float(n_var), 0.0)          # guard: negative n_var would NaN the sqrt

    # Lane-dense layout (no pad, no slice): metadata-only reshape.
    R, W = _choose_layout(N, B * S, D)
    x2 = tx.reshape(R, W)

    # Sufficient-statistic random fields, generated directly in kernel layout.
    k_e, k_z = jax.random.split(key)
    e = jax.random.exponential(k_e, (R, W), jnp.float32)   # |h|^2
    z = jax.random.normal(k_z, (R, W), jnp.float32)

    # Block rows: sublane-aligned, capped, and sized for >=4 grid steps on large
    # arrays (v7x dual-TensorCore sharding + prefetch/writeback overlap).
    if R <= 8:
        Rb = R
    else:
        target = min(max_block_rows, pl.cdiv(R, 4))
        Rb = max(8, (target // 8) * 8)
        Rb = min(Rb, R)
    grid = (pl.cdiv(R, Rb),)

    scale = jnp.asarray([math.sqrt(n_var / 2.0)], dtype=jnp.float32)

    blk = pl.BlockSpec((Rb, W), lambda i: (i, 0))
    smem = pl.BlockSpec(memory_space=pltpu.MemorySpace.SMEM)

    out2 = pl.pallas_call(
        _rayleigh_kernel,
        out_shape=jax.ShapeDtypeStruct((R, W), tx.dtype),
        grid=grid,
        in_specs=[smem, blk, blk, blk],
        out_specs=blk,
        compiler_params=pltpu.CompilerParams(
            dimension_semantics=("parallel",),
            vmem_limit_bytes=32 << 20,
        ),
    )(scale, x2, e, z)

    return out2.reshape(B, S, D)


if __name__ == "__main__":
    key = jax.random.PRNGKey(0)
    k_tx, k_ch0, k_ch1 = jax.random.split(key, 3)
    batch, seq_len, latent_dim = 2, 8, 32          # tx: [batch, seq_len, latent_dim]
    tx = jax.random.normal(k_tx, (batch, seq_len, latent_dim), jnp.float32)

    # 1) n_var = 0: perfect-CSI MRC cancels h, so y must equal tx (exactly,
    #    since the signal term no longer passes through a reciprocal).
    y0 = jax.block_until_ready(rayleigh_channel(tx, 0.0, k_ch0))
    assert y0.shape == tx.shape
    assert bool(jnp.all(jnp.isfinite(y0)))
    assert jnp.allclose(y0, tx, atol=1e-6, rtol=1e-6), "equalization identity failed"

    # 2) n_var = 0.1: y = tx + equalized noise (heavy-tailed because of 1/|h|^2).
    #    Distributional sanity check: the bulk of elements must stay near tx.
    n_var = 0.1
    y = jax.block_until_ready(rayleigh_channel(tx, n_var, k_ch1))
    assert y.shape == tx.shape
    assert bool(jnp.all(jnp.isfinite(y)))
    frac_close = float(jnp.mean(
        (jnp.abs(y - tx) < 10.0 * math.sqrt(n_var)).astype(jnp.float32)))
    assert frac_close > 0.9, f"too many outliers: frac_close={frac_close}"

    print("KERNEL_OK")
</pallas_src>

<mosaic_0001>
module attributes {stable_mosaic.version = 11 : i64} {
  func.func @_rayleigh_kernel(%arg0: i32, %arg1: memref<1xf32, #tpu.memory_space<smem>>, %arg2: memref<1x512xf32, #tpu.memory_space<vmem>>, %arg3: memref<1x512xf32, #tpu.memory_space<vmem>>, %arg4: memref<1x512xf32, #tpu.memory_space<vmem>>, %arg5: memref<1x512xf32, #tpu.memory_space<vmem>>) attributes {dimension_semantics = [#tpu.dimension_semantics<parallel>], iteration_bounds = array<i64: 1>, scalar_prefetch = 0 : i64, scratch_operands = 0 : i64, tpu.core_type = #tpu.core_type<tc>, window_params = [{transform_indices = @transform_0, window_bounds = array<i64: 1>}, {transform_indices = @transform_1, window_bounds = array<i64: 1, 512>}, {transform_indices = @transform_2, window_bounds = array<i64: 1, 512>}, {transform_indices = @transform_3, window_bounds = array<i64: 1, 512>}, {transform_indices = @transform_4, window_bounds = array<i64: 1, 512>}]} {
    %c0 = arith.constant 0 : index
    %0 = memref.load %arg1[%c0] : memref<1xf32, #tpu.memory_space<smem>>
    %c0_0 = arith.constant 0 : index
    %c0_1 = arith.constant 0 : index
    %1 = vector.load %arg2[%c0_0, %c0_1] : memref<1x512xf32, #tpu.memory_space<vmem>>, vector<1x512xf32>
    %c0_2 = arith.constant 0 : index
    %c0_3 = arith.constant 0 : index
    %2 = vector.load %arg3[%c0_2, %c0_3] : memref<1x512xf32, #tpu.memory_space<vmem>>, vector<1x512xf32>
    %c0_4 = arith.constant 0 : index
    %c0_5 = arith.constant 0 : index
    %3 = vector.load %arg4[%c0_4, %c0_5] : memref<1x512xf32, #tpu.memory_space<vmem>>, vector<1x512xf32>
    %cst = arith.constant 9.99999971E-10 : f32
    %4 = vector.broadcast %cst : f32 to vector<1x512xf32>
    %5 = arith.maximumf %2, %4 : vector<1x512xf32>
    %6 = math.sqrt %2 : vector<1x512xf32>
    %7 = vector.broadcast %0 : f32 to vector<1x512xf32>
    %8 = arith.mulf %7, %6 : vector<1x512xf32>
    %9 = arith.mulf %8, %3 : vector<1x512xf32>
    %10 = arith.divf %9, %5 : vector<1x512xf32>
    %11 = arith.addf %1, %10 : vector<1x512xf32>
    %c0_6 = arith.constant 0 : index
    %c0_7 = arith.constant 0 : index
    %12 = vector.load %arg5[%c0_6, %c0_7] : memref<1x512xf32, #tpu.memory_space<vmem>>, vector<1x512xf32>
    tpu.vector_store %arg5[%c0_6, %c0_7], %11 {strides = array<i32>} : memref<1x512xf32, #tpu.memory_space<vmem>>, vector<1x512xf32>,
    return
  }
  func.func @transform_0(%arg0: i32) -> i32 {
    %c0_i32 = arith.constant 0 : i32
    %c0_i32_0 = arith.constant 0 : i32
    return %c0_i32 : i32
  }
  func.func @transform_1(%arg0: i32) -> (i32, i32) {
    %c0_i32 = arith.constant 0 : i32
    %c0_i32_0 = arith.constant 0 : i32
    return %arg0, %c0_i32 : i32, i32
  }
  func.func @transform_2(%arg0: i32) -> (i32, i32) {
    %c0_i32 = arith.constant 0 : i32
    %c0_i32_0 = arith.constant 0 : i32
    return %arg0, %c0_i32 : i32, i32
  }
  func.func @transform_3(%arg0: i32) -> (i32, i32) {
    %c0_i32 = arith.constant 0 : i32
    %c0_i32_0 = arith.constant 0 : i32
    return %arg0, %c0_i32 : i32, i32
  }
  func.func @transform_4(%arg0: i32) -> (i32, i32) {
    %c0_i32 = arith.constant 0 : i32
    %c0_i32_0 = arith.constant 0 : i32
    return %arg0, %c0_i32 : i32, i32
  }
}

</mosaic_0001>

<bundles_post_ra>
// kernel: tpu_custom_call.1
= control target key start
LH: loop header
LB: loop body
LE: loop exit
PB: predicated region body
PF: predicated region fallthrough
CT: control target
= control target key end

     0   :  { %10 = vsyncpa [#allocation4], 0  ;;  %s198_s0 = inlined_call_operand.<no memory space> [shape: f32[1], index: 0, kind: input, shape index: {}]   ;;  %s199_s1 = inlined_call_operand.hbm [shape: f32[1,512], index: 1, kind: input, shape index: {}]   ;;  %s200_s2 = inlined_call_operand.hbm [shape: f32[1,512], index: 2, kind: input, shape index: {}]   ;;  %s201_s3 = inlined_call_operand.vmem [shape: f32[1,512], index: 3, kind: input, shape index: {}]   ;;  %s202_s4 = inlined_call_operand.hbm [shape: f32[1,512], index: 4, kind: output, shape index: {}]  }
   0x1   :  { %11 = vsyncpa [#allocation7], 0 }
   0x2   :  { %12 = vsyncpa [#allocation5], 0  ;;  %s155_s15 = smov [#allocation3]   ;;  %s156_s17 = smov [#allocation6]  }
   0x3   :  { %s21_s16 = sshll.u32 %s155_s15, 4  ;;  %s31_s18 = sshll.u32 %s156_s17, 4  ;;  %s22_s16 = int_to_ptr.vmem [resolvable:$true] %s21_s16  ;;  %s32_s18 = int_to_ptr.vmem [resolvable:$true] %s31_s18 }
   0x4   :  { %s97_s19 = scalar_lea.vmem %s22_s16, 64  ;;  %p102_p1 = scmp.lt.s32.totalorder %s22_s16, %s22_s16 }
   0x5   :  { %p98_p0 = scmp.ne.s32.totalorder %s22_s16, %s97_s19  ;;  %p103_p2 = scmp.lt.s32.totalorder %s97_s19, %s97_s19 }
   0x7   :  { %p104_p3 = por %p103_p2, %p102_p1 }
   0x9   :  { %p105_p4 = pnand %p104_p3, %p98_p0 }
   0xb   :  { %108 = shalt.err (!%p105_p4)
}
   0xc   :  { %24 = dma.hbm_to_vmem [thread:$0]  %s199_s1, 64, %s22_s16, [#allocation4]  }
   0xd   :  { %s117_s22 = scalar_lea.vmem %s32_s18, 64  ;;  %p122_p6 = scmp.lt.s32.totalorder %s32_s18, %s32_s18 }
   0xe   :  { %p118_p5 = scmp.ne.s32.totalorder %s32_s18, %s117_s22  ;;  %p123_p7 = scmp.lt.s32.totalorder %s117_s22, %s117_s22 }
  0x10   :  { %p124_p8 = por %p123_p7, %p122_p6 }
  0x12   :  { %p125_p9 = pnand %p124_p8, %p118_p5 }
  0x14   :  { %128 = shalt.err (!%p125_p9)
}
  0x15   :  { %34 = dma.hbm_to_vmem [thread:$0]  %s200_s2, 64, %s32_s18, [#allocation7]  }
  0x16   :  { %149 = dma.done.wait [#allocation4], 64  }
  0x17   :  { %150 = vsyncadd [#allocation4], 4294967232 }
  0x18   :  { %151 = dma.done.wait [#allocation7], 64  }
  0x19   :  { %152 = vsyncadd [#allocation7], 4294967232  ;;  %v45_v0 = vld [vmem:[#allocation6] sm:$0xf]  ;;  %v55_v5 = vstv %s198_s0  ;;  %v46_v7 = vld [vmem:[%s201_s3] sm:$0xf]  ;;  %v61_v11 = vlaneseq }
  0x1a   :  { %85 = vrsqrt.f32 %v45_v0  ;;  %v47_v1 = vmax.f32 %v45_v0, 1e-09  ;;  %vm50_vm0 = vcmp.eq.f32.partialorder %v45_v0, inf  ;;  %v53_v3 = vand.u32 2147483648, %v45_v0  ;;  %v44_v13 = vld [vmem:[#allocation3] sm:$0xf] }
  0x1b   :  { %vm52_vm1 = vcmp.eq.f32.partialorder %v45_v0, 0.0  ;;  %s157_s27 = smov [#allocation8]   ;;  %vm63_vm2 = vcmp.lt.s32.totalorder %v61_v11, 512 }
  0x1c   :  { %87 = vrcp.f32 %v47_v1  ;;  %s72_s28 = sshll.u32 %s157_s27, 4  ;;  %s73_s28 = int_to_ptr.vmem [resolvable:$true] %s72_s28 }
  0x1d   :  { %s129_s29 = scalar_lea.vmem %s73_s28, 64  ;;  %p134_p11 = scmp.lt.s32.totalorder %s73_s28, %s73_s28 }
  0x1e   :  { %p130_p10 = scmp.ne.s32.totalorder %s73_s28, %s129_s29  ;;  %p135_p12 = scmp.lt.s32.totalorder %s129_s29, %s129_s29 }
  0x20   :  { %p136_p13 = por %p135_p12, %p134_p11 }
  0x22   :  { %p137_p0 = pnand %p136_p13, %p130_p10 }
  0x27   :  { %v86_v2 = vpop.eup %85 }
  0x28   :  { %v49_v4 = vmul.f32 %v86_v2, %v45_v0 }
  0x29   :  { %v88_v10 = vpop.eup %87 }
  0x2a   :  { %v51_v6 = vsel %vm50_vm0, %v45_v0, %v49_v4 }
  0x2b   :  { %v54_v8 = vsel %vm52_vm1, %v53_v3, %v51_v6 }
  0x2c   :  { %v56_v9 = vmul.f32 %v55_v5, %v54_v8 }
  0x2e   :  { %v57_v12 = vmul.f32 %v56_v9, %v46_v7 }
  0x30   :  { %v59_v14 = vmul.f32 %v88_v10, %v57_v12 }
  0x32   :  { %v60_v15 = vadd.f32 %v59_v14, %v44_v13 }
  0x34   :  { %65 = vst.msk [vmem:[#allocation8] sm:$0xf] %vm63_vm2, %v60_v15 }
  0x35   :  { %140 = shalt.err (!%p137_p0)
}
  0x36   :  { %75 = dma.vmem_to_hbm [thread:$0]  %s73_s28, 64, %s202_s4, [#allocation5]  }
  0x37   :  { %153 = dma.done.wait [#allocation5], 64  }
  0x38   :  { %154 = vsyncadd [#allocation5], 4294967232 }
  0x39   :  { %79 = vsyncpa [#allocation4], 1 }
  0x3a   :  { %80 = vsyncpa [#allocation7], 1 }
  0x3b   :  { %81 = vsyncpa [#allocation5], 1 }

</bundles_post_ra>
